<compile_context>
chip_gen: v6e
topology: v6e:2x2x1
jax: 0.10.0
libtpu: 0.0.40
codegen_flags: <defaults>
</compile_context>

<pallas_src>
import functools

import jax
import jax.numpy as jnp
from jax import lax
from jax.experimental import pallas as pl
from jax.experimental.pallas import tpu as pltpu

LANES = 128
ACC_ROWS = 8              # one f32 vreg per accumulated quantity
CHUNK_ROWS = 128          # rows per in-register chunk (multiple of 16)
MAX_BLOCK_ROWS = 8192     # 8192*128*4B = 4 MiB per operand per grid step (f32)

_PARALLEL = getattr(pltpu, "PARALLEL", "parallel")
_ARBITRARY = getattr(pltpu, "ARBITRARY", "arbitrary")
_CORE_PARALLEL = getattr(pltpu, "CORE_PARALLEL", None)


def _round_up(a, b):
    return ((a + b - 1) // b) * b


def _cdiv(a, b):
    return -(-a // b)


def _core_split():
    """Return (leading-axis dimension_semantics, #TensorCores to split over)."""
    kind = ""
    try:
        kind = jax.devices()[0].device_kind.lower()
    except Exception:
        pass
    if ("v7" in kind or "tpu7" in kind) and _CORE_PARALLEL is not None:
        return _CORE_PARALLEL, 2       # v7x: 2 TCs; CORE_PARALLEL engages the split
    if "v4" in kind or "v5p" in kind:
        return _PARALLEL, 2            # megacore: "parallel" shards the axis
    return _PARALLEL, 1                # v5e / v6e: single TensorCore


def _ftl_sums_kernel(x_ref, t_ref, out_ref, *, rows, block_rows, chunk_rows,
                     num_full_blocks):
    """Accumulate [sum(p*t), sum(p), sum(t)] into a resident (3, 8, 128) block.

    x_ref, t_ref : (block_rows, 128) input tiles (logits / targets)
    out_ref      : (3, ACC_ROWS, LANES) f32 accumulator, resident across the
                   reduction ("arbitrary") grid axis.

    Note: row indices are int32; valid for n < 2**31 * 128 elements.
    """
    c = pl.program_id(0)               # per-TensorCore axis
    s = pl.program_id(1)               # reduction axis
    blk = c * pl.num_programs(1) + s   # logical block index

    @pl.when(s == 0)
    def _():
        out_ref[...] = jnp.zeros_like(out_ref)

    n_chunks = block_rows // chunk_rows
    groups = chunk_rows // ACC_ROWS

    def chunk_sums(ci, masked):
        off = ci * chunk_rows
        start = pl.multiple_of(off, chunk_rows)
        x = x_ref[pl.ds(start, chunk_rows), :].astype(jnp.float32)
        t = t_ref[pl.ds(start, chunk_rows), :].astype(jnp.float32)
        # sigmoid(x) == 0.5 * (tanh(0.5*x) + 1): single EUP op per vreg.
        p = 0.5 * (jnp.tanh(0.5 * x) + 1.0)
        if masked:
            # Rows still valid in this chunk (<= 0 for duplicate blocks).
            valid = rows - blk * block_rows - off
            row_ids = lax.broadcasted_iota(jnp.int32, (chunk_rows, 1), 0)
            keep = row_ids < valid
            # Mask AFTER the transcendental so garbage tail data (possibly NaN)
            # is discarded by the select, never by arithmetic.
            p = jnp.where(keep, p, 0.0)
            t = jnp.where(keep, t, 0.0)
        red = lambda a: jnp.sum(a.reshape(groups, ACC_ROWS, LANES), axis=0)
        return red(p * t), red(p), red(t)

    def accumulate(masked):
        def body(ci, carry):
            a_pt, a_p, a_t = carry
            d_pt, d_p, d_t = chunk_sums(ci, masked)
            return a_pt + d_pt, a_p + d_p, a_t + d_t

        zero = jnp.zeros((ACC_ROWS, LANES), jnp.float32)
        a_pt, a_p, a_t = lax.fori_loop(0, n_chunks, body, (zero, zero, zero))
        out_ref[0] += a_pt
        out_ref[1] += a_p
        out_ref[2] += a_t

    # Fast path: steady-state full blocks — no masking at all.
    @pl.when(blk < num_full_blocks)
    def _():
        accumulate(masked=False)

    # Slow path: the single ragged last block and any duplicate block produced
    # by the per-core grid rounding (contributes zero).
    @pl.when(blk >= num_full_blocks)
    def _():
        accumulate(masked=True)


def _kernel_sums(x2, t2):
    """x2, t2: (rows, 128).  Returns (3,) = [sum(p*t), sum(p), sum(t)]."""
    rows = x2.shape[0]

    chunk_rows = CHUNK_ROWS if rows >= CHUNK_ROWS else _round_up(rows, 16)
    block_rows = min(MAX_BLOCK_ROWS, _round_up(rows, chunk_rows))
    num_blocks = _cdiv(rows, block_rows)

    last_valid = rows - (num_blocks - 1) * block_rows
    num_full_blocks = num_blocks if last_valid == block_rows else num_blocks - 1

    core_sem, ncores_hw = _core_split()
    ncores = ncores_hw if num_blocks >= ncores_hw else 1
    if ncores == 1:
        core_sem = _ARBITRARY
    steps = _cdiv(num_blocks, ncores)

    kernel = functools.partial(
        _ftl_sums_kernel, rows=rows, block_rows=block_rows,
        chunk_rows=chunk_rows, num_full_blocks=num_full_blocks)

    def in_map(c, s):
        # Clamp duplicate trailing blocks (when ncores*steps > num_blocks) onto
        # the last real block; the kernel masks their contribution to zero.
        return (jnp.minimum(c * steps + s, num_blocks - 1), 0)

    out = pl.pallas_call(
        kernel,
        out_shape=jax.ShapeDtypeStruct((ncores, 3, ACC_ROWS, LANES), jnp.float32),
        grid_spec=pltpu.PrefetchScalarGridSpec(
            num_scalar_prefetch=0,
            grid=(ncores, steps),
            in_specs=[
                pl.BlockSpec((block_rows, LANES), in_map),
                pl.BlockSpec((block_rows, LANES), in_map),
            ],
            out_specs=pl.BlockSpec(
                (None, 3, ACC_ROWS, LANES), lambda c, s: (c, 0, 0, 0)),
        ),
        compiler_params=pltpu.CompilerParams(
            dimension_semantics=(core_sem, _ARBITRARY),
            vmem_limit_bytes=32 * 1024 * 1024,
        ),
    )(x2, t2)

    # Final cross-lane reduction done once here (tiny).
    return jnp.sum(out, axis=(0, 2, 3))


def _tp_sums(inputs_flat, targets_flat):
    """Return (sum(p*t), sum(p), sum(t)) with p = sigmoid(inputs)."""
    n = inputs_flat.shape[0]
    n_main = (n // LANES) * LANES

    sums = jnp.zeros((3,), jnp.float32)
    if n_main > 0:
        x2 = inputs_flat[:n_main].reshape(n_main // LANES, LANES)
        t2 = targets_flat[:n_main].reshape(n_main // LANES, LANES)
        sums = sums + _kernel_sums(x2, t2)
    if n_main != n:
        # <128-element ragged tail: tiny pure-JAX reduction. Avoids the
        # jnp.pad path that would materialize full HBM copies of both inputs.
        px = jax.nn.sigmoid(inputs_flat[n_main:].astype(jnp.float32))
        tt = targets_flat[n_main:].astype(jnp.float32)
        sums = sums + jnp.stack([jnp.sum(px * tt), jnp.sum(px), jnp.sum(tt)])
    return sums[0], sums[1], sums[2]


@functools.partial(jax.jit, static_argnames=("smooth", "alpha", "beta", "gamma"))
def focal_tversky_loss(inputs, targets, smooth=100.0, alpha=0.3, beta=0.7,
                       gamma=4.0 / 3.0):
    """Matches FocalTverskyLoss.forward(inputs, targets)."""
    sum_pt, sum_p, sum_t = _tp_sums(inputs.reshape(-1), targets.reshape(-1))
    tp = sum_pt
    fp = sum_p - sum_pt            # == sum((1 - t) * p)
    fn = sum_t - sum_pt            # == sum(t * (1 - p))
    tversky = (tp + smooth) / (tp + alpha * fp + beta * fn + smooth)
    return (1.0 - tversky) ** (1.0 / gamma)


def _reference(inputs, targets, smooth=100.0, alpha=0.3, beta=0.7,
               gamma=4.0 / 3.0):
    p = jax.nn.sigmoid(inputs.astype(jnp.float32)).reshape(-1)
    t = targets.astype(jnp.float32).reshape(-1)
    tp = jnp.sum(p * t)
    fp = jnp.sum((1.0 - t) * p)
    fn = jnp.sum(t * (1.0 - p))
    tversky = (tp + smooth) / (tp + alpha * fp + beta * fn + smooth)
    return (1.0 - tversky) ** (1.0 / gamma)


if __name__ == "__main__":
    key = jax.random.PRNGKey(0)
    k1, k2 = jax.random.split(key)

    # NCHW logits and binary targets (module has no parameters to initialize).
    B, C, H, W = 2, 4, 16, 16
    inputs = jax.random.normal(k1, (B, C, H, W), dtype=jnp.float32)
    targets = (jax.random.uniform(k2, (B, C, H, W)) > 0.5).astype(jnp.float32)

    loss = focal_tversky_loss(inputs, targets)
    jax.block_until_ready(loss)

    ref = _reference(inputs, targets)
    assert jnp.allclose(loss, ref, rtol=1e-5, atol=1e-5), (loss, ref)

    print("KERNEL_OK")
</pallas_src>

<mosaic_0001>
module attributes {stable_mosaic.version = 11 : i64} {
  func.func @_ftl_sums_kernel(%arg0: i32, %arg1: i32, %arg2: memref<16x128xf32, #tpu.memory_space<vmem>>, %arg3: memref<16x128xf32, #tpu.memory_space<vmem>>, %arg4: memref<1x3x8x128xf32, #tpu.memory_space<vmem>>) attributes {dimension_semantics = [#tpu.dimension_semantics<arbitrary>, #tpu.dimension_semantics<arbitrary>], iteration_bounds = array<i64: 1, 1>, scalar_prefetch = 0 : i64, scratch_operands = 0 : i64, tpu.core_type = #tpu.core_type<tc>, window_params = [{transform_indices = @transform_0, window_bounds = array<i64: 16, 128>}, {transform_indices = @transform_1, window_bounds = array<i64: 16, 128>}, {transform_indices = @transform_2, window_bounds = array<i64: 1, 3, 8, 128>}]} {
    %c1_i32 = arith.constant 1 : i32
    %0 = arith.muli %arg0, %c1_i32 : i32
    %1 = arith.addi %0, %arg1 : i32
    %c0_i32 = arith.constant 0 : i32
    %2 = arith.cmpi eq, %arg1, %c0_i32 : i32
    %3 = arith.extui %2 : i1 to i32
    %c0_i32_0 = arith.constant 0 : i32
    %4 = arith.cmpi ne, %3, %c0_i32_0 : i32
    scf.if %4 {
      %cst = arith.constant 0.000000e+00 : f32
      %11 = vector.broadcast %cst : f32 to vector<3x8x128xf32>
      %c0 = arith.constant 0 : index
      %c0_5 = arith.constant 0 : index
      %c0_6 = arith.constant 0 : index
      %c0_7 = arith.constant 0 : index
      %12 = vector.load %arg4[%c0, %c0_5, %c0_6, %c0_7] : memref<1x3x8x128xf32, #tpu.memory_space<vmem>>, vector<1x3x8x128xf32>
      %13 = vector.shape_cast %12 : vector<1x3x8x128xf32> to vector<3x8x128xf32>
      %14 = vector.shape_cast %11 : vector<3x8x128xf32> to vector<1x3x8x128xf32>
      tpu.vector_store %arg4[%c0, %c0_5, %c0_6, %c0_7], %14 {strides = array<i32>} : memref<1x3x8x128xf32, #tpu.memory_space<vmem>>, vector<1x3x8x128xf32>,
    } else {
    }
    %c1_i32_1 = arith.constant 1 : i32
    %5 = arith.cmpi slt, %1, %c1_i32_1 : i32
    %6 = arith.extui %5 : i1 to i32
    %c0_i32_2 = arith.constant 0 : i32
    %7 = arith.cmpi ne, %6, %c0_i32_2 : i32
    scf.if %7 {
      %cst = arith.constant 0.000000e+00 : f32
      %11 = vector.broadcast %cst : f32 to vector<8x128xf32>
      %c0_i32_5 = arith.constant 0 : i32
      %c16_i32 = arith.constant 16 : i32
      %12 = arith.muli %c0_i32_5, %c16_i32 : i32
      %13 = tpu.assume_multiple %12, 16 : i32
      %14 = arith.index_cast %13 : i32 to index
      %c0 = arith.constant 0 : index
      %15 = vector.load %arg2[%14, %c0] : memref<16x128xf32, #tpu.memory_space<vmem>>, vector<16x128xf32>
      %16 = arith.index_cast %13 : i32 to index
      %c0_6 = arith.constant 0 : index
      %17 = vector.load %arg3[%16, %c0_6] : memref<16x128xf32, #tpu.memory_space<vmem>>, vector<16x128xf32>
      %cst_7 = arith.constant 5.000000e-01 : f32
      %18 = vector.broadcast %cst_7 : f32 to vector<16x128xf32>
      %19 = arith.mulf %18, %15 : vector<16x128xf32>
      %20 = math.tanh %19 : vector<16x128xf32>
      %cst_8 = arith.constant 1.000000e+00 : f32
      %21 = vector.broadcast %cst_8 : f32 to vector<16x128xf32>
      %22 = arith.addf %20, %21 : vector<16x128xf32>
      %cst_9 = arith.constant 5.000000e-01 : f32
      %23 = vector.broadcast %cst_9 : f32 to vector<16x128xf32>
      %24 = arith.mulf %23, %22 : vector<16x128xf32>
      %25 = arith.mulf %24, %17 : vector<16x128xf32>
      %26 = vector.shape_cast %25 : vector<16x128xf32> to vector<2x8x128xf32>
      %cst_10 = arith.constant dense<0.000000e+00> : vector<8x128xf32>
      %27 = vector.multi_reduction <add>, %26, %cst_10 [0] : vector<2x8x128xf32> to vector<8x128xf32>
      %28 = vector.shape_cast %24 : vector<16x128xf32> to vector<2x8x128xf32>
      %cst_11 = arith.constant dense<0.000000e+00> : vector<8x128xf32>
      %29 = vector.multi_reduction <add>, %28, %cst_11 [0] : vector<2x8x128xf32> to vector<8x128xf32>
      %30 = vector.shape_cast %17 : vector<16x128xf32> to vector<2x8x128xf32>
      %cst_12 = arith.constant dense<0.000000e+00> : vector<8x128xf32>
      %31 = vector.multi_reduction <add>, %30, %cst_12 [0] : vector<2x8x128xf32> to vector<8x128xf32>
      %32 = arith.addf %11, %27 : vector<8x128xf32>
      %33 = arith.addf %11, %29 : vector<8x128xf32>
      %34 = arith.addf %11, %31 : vector<8x128xf32>
      %c1_i32_13 = arith.constant 1 : i32
      %c0_14 = arith.constant 0 : index
      %c0_15 = arith.constant 0 : index
      %c0_16 = arith.constant 0 : index
      %c0_17 = arith.constant 0 : index
      %35 = vector.load %arg4[%c0_14, %c0_15, %c0_16, %c0_17] : memref<1x3x8x128xf32, #tpu.memory_space<vmem>>, vector<1x1x8x128xf32>
      %36 = vector.shape_cast %35 : vector<1x1x8x128xf32> to vector<8x128xf32>
      %37 = arith.addf %36, %32 : vector<8x128xf32>
      %c0_18 = arith.constant 0 : index
      %c0_19 = arith.constant 0 : index
      %c0_20 = arith.constant 0 : index
      %c0_21 = arith.constant 0 : index
      %38 = vector.load %arg4[%c0_18, %c0_19, %c0_20, %c0_21] : memref<1x3x8x128xf32, #tpu.memory_space<vmem>>, vector<1x1x8x128xf32>
      %39 = vector.shape_cast %38 : vector<1x1x8x128xf32> to vector<8x128xf32>
      %40 = vector.shape_cast %37 : vector<8x128xf32> to vector<1x1x8x128xf32>
      tpu.vector_store %arg4[%c0_18, %c0_19, %c0_20, %c0_21], %40 {strides = array<i32>} : memref<1x3x8x128xf32, #tpu.memory_space<vmem>>, vector<1x1x8x128xf32>,
      %c0_22 = arith.constant 0 : index
      %c1 = arith.constant 1 : index
      %c0_23 = arith.constant 0 : index
      %c0_24 = arith.constant 0 : index
      %41 = vector.load %arg4[%c0_22, %c1, %c0_23, %c0_24] : memref<1x3x8x128xf32, #tpu.memory_space<vmem>>, vector<1x1x8x128xf32>
      %42 = vector.shape_cast %41 : vector<1x1x8x128xf32> to vector<8x128xf32>
      %43 = arith.addf %42, %33 : vector<8x128xf32>
      %c0_25 = arith.constant 0 : index
      %c1_26 = arith.constant 1 : index
      %c0_27 = arith.constant 0 : index
      %c0_28 = arith.constant 0 : index
      %44 = vector.load %arg4[%c0_25, %c1_26, %c0_27, %c0_28] : memref<1x3x8x128xf32, #tpu.memory_space<vmem>>, vector<1x1x8x128xf32>
      %45 = vector.shape_cast %44 : vector<1x1x8x128xf32> to vector<8x128xf32>
      %46 = vector.shape_cast %43 : vector<8x128xf32> to vector<1x1x8x128xf32>
      tpu.vector_store %arg4[%c0_25, %c1_26, %c0_27, %c0_28], %46 {strides = array<i32>} : memref<1x3x8x128xf32, #tpu.memory_space<vmem>>, vector<1x1x8x128xf32>,
      %c0_29 = arith.constant 0 : index
      %c2 = arith.constant 2 : index
      %c0_30 = arith.constant 0 : index
      %c0_31 = arith.constant 0 : index
      %47 = vector.load %arg4[%c0_29, %c2, %c0_30, %c0_31] : memref<1x3x8x128xf32, #tpu.memory_space<vmem>>, vector<1x1x8x128xf32>
      %48 = vector.shape_cast %47 : vector<1x1x8x128xf32> to vector<8x128xf32>
      %49 = arith.addf %48, %34 : vector<8x128xf32>
      %c0_32 = arith.constant 0 : index
      %c2_33 = arith.constant 2 : index
      %c0_34 = arith.constant 0 : index
      %c0_35 = arith.constant 0 : index
      %50 = vector.load %arg4[%c0_32, %c2_33, %c0_34, %c0_35] : memref<1x3x8x128xf32, #tpu.memory_space<vmem>>, vector<1x1x8x128xf32>
      %51 = vector.shape_cast %50 : vector<1x1x8x128xf32> to vector<8x128xf32>
      %52 = vector.shape_cast %49 : vector<8x128xf32> to vector<1x1x8x128xf32>
      tpu.vector_store %arg4[%c0_32, %c2_33, %c0_34, %c0_35], %52 {strides = array<i32>} : memref<1x3x8x128xf32, #tpu.memory_space<vmem>>, vector<1x1x8x128xf32>,
    } else {
    }
    %c1_i32_3 = arith.constant 1 : i32
    %8 = arith.cmpi sge, %1, %c1_i32_3 : i32
    %9 = arith.extui %8 : i1 to i32
    %c0_i32_4 = arith.constant 0 : i32
    %10 = arith.cmpi ne, %9, %c0_i32_4 : i32
    scf.if %10 {
      %cst = arith.constant 0.000000e+00 : f32
      %11 = vector.broadcast %cst : f32 to vector<8x128xf32>
      %c0_i32_5 = arith.constant 0 : i32
      %c16_i32 = arith.constant 16 : i32
      %12 = arith.muli %c0_i32_5, %c16_i32 : i32
      %13 = tpu.assume_multiple %12, 16 : i32
      %14 = arith.index_cast %13 : i32 to index
      %c0 = arith.constant 0 : index
      %15 = vector.load %arg2[%14, %c0] : memref<16x128xf32, #tpu.memory_space<vmem>>, vector<16x128xf32>
      %16 = arith.index_cast %13 : i32 to index
      %c0_6 = arith.constant 0 : index
      %17 = vector.load %arg3[%16, %c0_6] : memref<16x128xf32, #tpu.memory_space<vmem>>, vector<16x128xf32>
      %cst_7 = arith.constant 5.000000e-01 : f32
      %18 = vector.broadcast %cst_7 : f32 to vector<16x128xf32>
      %19 = arith.mulf %18, %15 : vector<16x128xf32>
      %20 = math.tanh %19 : vector<16x128xf32>
      %cst_8 = arith.constant 1.000000e+00 : f32
      %21 = vector.broadcast %cst_8 : f32 to vector<16x128xf32>
      %22 = arith.addf %20, %21 : vector<16x128xf32>
      %cst_9 = arith.constant 5.000000e-01 : f32
      %23 = vector.broadcast %cst_9 : f32 to vector<16x128xf32>
      %24 = arith.mulf %23, %22 : vector<16x128xf32>
      %c16_i32_10 = arith.constant 16 : i32
      %25 = arith.muli %1, %c16_i32_10 : i32
      %c16_i32_11 = arith.constant 16 : i32
      %26 = arith.subi %c16_i32_11, %25 : i32
      %27 = arith.subi %26, %12 : i32
      %28 = tpu.iota {dimensions = array<i32: 0>} : vector<16x1xi32>
      %29 = vector.broadcast %27 : i32 to vector<16x1xi32>
      %30 = arith.cmpi slt, %28, %29 : vector<16x1xi32>
      %cst_12 = arith.constant 0.000000e+00 : f32
      %31 = vector.shape_cast %30 : vector<16x1xi1> to vector<16x1xi1>
      %32 = vector.broadcast %31 : vector<16x1xi1> to vector<16x128xi1>
      %33 = vector.broadcast %cst_12 : f32 to vector<16x128xf32>
      %34 = arith.select %32, %24, %33 : vector<16x128xi1>, vector<16x128xf32>
      %cst_13 = arith.constant 0.000000e+00 : f32
      %35 = vector.shape_cast %30 : vector<16x1xi1> to vector<16x1xi1>
      %36 = vector.broadcast %35 : vector<16x1xi1> to vector<16x128xi1>
      %37 = vector.broadcast %cst_13 : f32 to vector<16x128xf32>
      %38 = arith.select %36, %17, %37 : vector<16x128xi1>, vector<16x128xf32>
      %39 = arith.mulf %34, %38 : vector<16x128xf32>
      %40 = vector.shape_cast %39 : vector<16x128xf32> to vector<2x8x128xf32>
      %cst_14 = arith.constant dense<0.000000e+00> : vector<8x128xf32>
      %41 = vector.multi_reduction <add>, %40, %cst_14 [0] : vector<2x8x128xf32> to vector<8x128xf32>
      %42 = vector.shape_cast %34 : vector<16x128xf32> to vector<2x8x128xf32>
      %cst_15 = arith.constant dense<0.000000e+00> : vector<8x128xf32>
      %43 = vector.multi_reduction <add>, %42, %cst_15 [0] : vector<2x8x128xf32> to vector<8x128xf32>
      %44 = vector.shape_cast %38 : vector<16x128xf32> to vector<2x8x128xf32>
      %cst_16 = arith.constant dense<0.000000e+00> : vector<8x128xf32>
      %45 = vector.multi_reduction <add>, %44, %cst_16 [0] : vector<2x8x128xf32> to vector<8x128xf32>
      %46 = arith.addf %11, %41 : vector<8x128xf32>
      %47 = arith.addf %11, %43 : vector<8x128xf32>
      %48 = arith.addf %11, %45 : vector<8x128xf32>
      %c1_i32_17 = arith.constant 1 : i32
      %c0_18 = arith.constant 0 : index
      %c0_19 = arith.constant 0 : index
      %c0_20 = arith.constant 0 : index
      %c0_21 = arith.constant 0 : index
      %49 = vector.load %arg4[%c0_18, %c0_19, %c0_20, %c0_21] : memref<1x3x8x128xf32, #tpu.memory_space<vmem>>, vector<1x1x8x128xf32>
      %50 = vector.shape_cast %49 : vector<1x1x8x128xf32> to vector<8x128xf32>
      %51 = arith.addf %50, %46 : vector<8x128xf32>
      %c0_22 = arith.constant 0 : index
      %c0_23 = arith.constant 0 : index
      %c0_24 = arith.constant 0 : index
      %c0_25 = arith.constant 0 : index
      %52 = vector.load %arg4[%c0_22, %c0_23, %c0_24, %c0_25] : memref<1x3x8x128xf32, #tpu.memory_space<vmem>>, vector<1x1x8x128xf32>
      %53 = vector.shape_cast %52 : vector<1x1x8x128xf32> to vector<8x128xf32>
      %54 = vector.shape_cast %51 : vector<8x128xf32> to vector<1x1x8x128xf32>
      tpu.vector_store %arg4[%c0_22, %c0_23, %c0_24, %c0_25], %54 {strides = array<i32>} : memref<1x3x8x128xf32, #tpu.memory_space<vmem>>, vector<1x1x8x128xf32>,
      %c0_26 = arith.constant 0 : index
      %c1 = arith.constant 1 : index
      %c0_27 = arith.constant 0 : index
      %c0_28 = arith.constant 0 : index
      %55 = vector.load %arg4[%c0_26, %c1, %c0_27, %c0_28] : memref<1x3x8x128xf32, #tpu.memory_space<vmem>>, vector<1x1x8x128xf32>
      %56 = vector.shape_cast %55 : vector<1x1x8x128xf32> to vector<8x128xf32>
      %57 = arith.addf %56, %47 : vector<8x128xf32>
      %c0_29 = arith.constant 0 : index
      %c1_30 = arith.constant 1 : index
      %c0_31 = arith.constant 0 : index
      %c0_32 = arith.constant 0 : index
      %58 = vector.load %arg4[%c0_29, %c1_30, %c0_31, %c0_32] : memref<1x3x8x128xf32, #tpu.memory_space<vmem>>, vector<1x1x8x128xf32>
      %59 = vector.shape_cast %58 : vector<1x1x8x128xf32> to vector<8x128xf32>
      %60 = vector.shape_cast %57 : vector<8x128xf32> to vector<1x1x8x128xf32>
      tpu.vector_store %arg4[%c0_29, %c1_30, %c0_31, %c0_32], %60 {strides = array<i32>} : memref<1x3x8x128xf32, #tpu.memory_space<vmem>>, vector<1x1x8x128xf32>,
      %c0_33 = arith.constant 0 : index
      %c2 = arith.constant 2 : index
      %c0_34 = arith.constant 0 : index
      %c0_35 = arith.constant 0 : index
      %61 = vector.load %arg4[%c0_33, %c2, %c0_34, %c0_35] : memref<1x3x8x128xf32, #tpu.memory_space<vmem>>, vector<1x1x8x128xf32>
      %62 = vector.shape_cast %61 : vector<1x1x8x128xf32> to vector<8x128xf32>
      %63 = arith.addf %62, %48 : vector<8x128xf32>
      %c0_36 = arith.constant 0 : index
      %c2_37 = arith.constant 2 : index
      %c0_38 = arith.constant 0 : index
      %c0_39 = arith.constant 0 : index
      %64 = vector.load %arg4[%c0_36, %c2_37, %c0_38, %c0_39] : memref<1x3x8x128xf32, #tpu.memory_space<vmem>>, vector<1x1x8x128xf32>
      %65 = vector.shape_cast %64 : vector<1x1x8x128xf32> to vector<8x128xf32>
      %66 = vector.shape_cast %63 : vector<8x128xf32> to vector<1x1x8x128xf32>
      tpu.vector_store %arg4[%c0_36, %c2_37, %c0_38, %c0_39], %66 {strides = array<i32>} : memref<1x3x8x128xf32, #tpu.memory_space<vmem>>, vector<1x1x8x128xf32>,
    } else {
    }
    return
  }
  func.func @transform_0(%arg0: i32, %arg1: i32) -> (i32, i32) {
    %c1_i32 = arith.constant 1 : i32
    %0 = arith.muli %arg0, %c1_i32 : i32
    %1 = arith.addi %0, %arg1 : i32
    %c0_i32 = arith.constant 0 : i32
    %2 = arith.minsi %1, %c0_i32 : i32
    %c0_i32_0 = arith.constant 0 : i32
    %c0_i32_1 = arith.constant 0 : i32
    return %2, %c0_i32_0 : i32, i32
  }
  func.func @transform_1(%arg0: i32, %arg1: i32) -> (i32, i32) {
    %c1_i32 = arith.constant 1 : i32
    %0 = arith.muli %arg0, %c1_i32 : i32
    %1 = arith.addi %0, %arg1 : i32
    %c0_i32 = arith.constant 0 : i32
    %2 = arith.minsi %1, %c0_i32 : i32
    %c0_i32_0 = arith.constant 0 : i32
    %c0_i32_1 = arith.constant 0 : i32
    return %2, %c0_i32_0 : i32, i32
  }
  func.func @transform_2(%arg0: i32, %arg1: i32) -> (i32, i32, i32, i32) {
    %c0_i32 = arith.constant 0 : i32
    %c0_i32_0 = arith.constant 0 : i32
    %c0_i32_1 = arith.constant 0 : i32
    %c0_i32_2 = arith.constant 0 : i32
    return %arg0, %c0_i32, %c0_i32_0, %c0_i32_1 : i32, i32, i32, i32
  }
}

</mosaic_0001>

<bundles_post_ra>
// kernel: focal_tversky_loss.1
= control target key start
LH: loop header
LB: loop body
LE: loop exit
PB: predicated region body
PF: predicated region fallthrough
CT: control target
= control target key end

     0   :  { %s234_s0 = inlined_call_operand.vmem [shape: f32[16,128], index: 0, kind: input, shape index: {}]   ;;  %s235_s1 = inlined_call_operand.vmem [shape: f32[16,128], index: 1, kind: input, shape index: {}]   ;;  %s236_s2 = inlined_call_operand.vmem [shape: f32[1,3,8,128], index: 2, kind: output, shape index: {}]  }
   0x1   :  { %v87_v0 = vld [vmem:[%s234_s0] sm:$0xff]  ;;  %v88_v1 = vld [vmem:[%s234_s0 + $0x8] sm:$0xff] }
   0x2   :  { %v89_v2 = vld [vmem:[%s235_s1] sm:$0xff]  ;;  %v90_v3 = vld [vmem:[%s235_s1 + $0x8] sm:$0xff]  ;;  %v91_v4 = vmul.f32 0.5, %v87_v0  ;;  %v92_v5 = vmul.f32 0.5, %v88_v1 }
   0x3   :  { %v103_v6 = vadd.f32 %v90_v3, %v89_v2 }
   0x4   :  { %194 = vtanh.f32 %v91_v4 }
   0x5   :  { %196 = vtanh.f32 %v92_v5  ;;  %188 = vst [vmem:[%s236_s2 + $0x10] sm:$0xff] %v103_v6 }
  0x11   :  { %v195_v7 = vpop.eup %194 }
  0x12   :  { %v197_v8 = vpop.eup %196  ;;  %v95_v9 = vadd.f32 1.0, %v195_v7 }
  0x13   :  { %v96_v10 = vadd.f32 1.0, %v197_v8 }
  0x14   :  { %v97_v11 = vmul.f32 0.5, %v95_v9 }
  0x15   :  { %v98_v12 = vmul.f32 0.5, %v96_v10 }
  0x16   :  { %v99_v13 = vmul.f32 %v97_v11, %v89_v2 }
  0x17   :  { %v100_v14 = vmul.f32 %v98_v12, %v90_v3  ;;  %v102_v15 = vadd.f32 %v98_v12, %v97_v11 }
  0x19   :  { %v101_v16 = vadd.f32 %v100_v14, %v99_v13  ;;  %186 = vst [vmem:[%s236_s2 + $0x8] sm:$0xff] %v102_v15 }
  0x1b   :  { %109 = vst [vmem:[%s236_s2] sm:$0xff] %v101_v16 }

</bundles_post_ra>
